<compile_context>
chip_gen: v7x
topology: tpu7x:2x2x1
jax: 0.10.0
libtpu: 0.0.40
codegen_flags: <defaults>
</compile_context>

<pallas_src>
import functools

import jax
import jax.numpy as jnp
import numpy as np
from jax.experimental import pallas as pl
from jax.experimental.pallas import tpu as pltpu


def _round_up(x, m):
    return (x + m - 1) // m * m


# ----------------------------------------------------------------------------
# Pallas kernel: one tile of tm flat spatial positions (M on lanes).
# ----------------------------------------------------------------------------
def _convlstm_kernel(a_ref, b_ref, w_ref, c_ref, cell_ref, hide_ref,
                     *, offsets, tm, halo, gate_dtype):
    # a_ref : (Cc_pad, tm)            bf16  this tile's window of the flat image
    # b_ref : (Cc_pad, tm)            bf16  next block (only first 2*halo lanes used)
    # w_ref : (4*Cout, K*K*Cc_pad)    bf16  packed gate weights [g,o,i,f]; bias is
    #                                        folded into the ones-channel column
    # c_ref : (Cout, tm)              f32   prevCell tile
    cout = cell_ref.shape[0]

    # Haloed slab: tm lanes of this block + 2*halo lanes borrowed from the next.
    if halo > 0:
        sl = jnp.concatenate([a_ref[...], b_ref[:, :2 * halo]], axis=1)
    else:
        sl = a_ref[...]                                    # (Cc_pad, tm + 2*halo)

    # In-register im2col: stack the K*K lane-shifted views sublane-wise
    # (each piece is a 16-sublane, vreg-aligned group) and run ONE deep
    # contraction on the MXU.  Accumulation never leaves the MXU.
    rhs = jnp.concatenate([sl[:, off:off + tm] for off in offsets], axis=0)
    z = jnp.dot(w_ref[...], rhs, preferred_element_type=jnp.float32)  # (4*Cout, tm)

    # Gate order [g, o, i, f]: f32-aligned row slices, then cast for the EUP.
    zg = z[0 * cout:1 * cout, :].astype(gate_dtype)
    zo = z[1 * cout:2 * cout, :].astype(gate_dtype)
    zi = z[2 * cout:3 * cout, :].astype(gate_dtype)
    zf = z[3 * cout:4 * cout, :].astype(gate_dtype)
    g = jnp.tanh(zg)
    o = jax.nn.sigmoid(zo)
    i = jax.nn.sigmoid(zi)
    f = jax.nn.sigmoid(zf)

    # Cell state stays f32.
    cell = f.astype(jnp.float32) * c_ref[...] + (i * g).astype(jnp.float32)
    cell_ref[...] = cell
    hide_ref[...] = (o.astype(jnp.float32) * jnp.tanh(cell)).astype(hide_ref.dtype)


# ----------------------------------------------------------------------------
# Weight packing (matches the stacked-RHS layout; bias folded in).
# ----------------------------------------------------------------------------
def _pack_weights(params, k, cin, cout, cc_pad, bias_tap):
    """-> (4*Cout, K*K*Cc_pad) bf16, column index = (di*K + dj)*Cc_pad + channel.

    Channels 0..Cin-1 are x, Cin..Cc-1 are prevHide, channel Cc is the all-ones
    bias channel (weight = b_x + b_h on the centre tap only), the rest are pad.
    """
    cc = cin + cout
    gates = []
    for gname in ("g", "o", "i", "f"):
        w = jnp.concatenate([params[f"w_{gname}x"], params[f"w_{gname}h"]], axis=1)
        # (Cout, Cc, K, K) -> (Cout, K*K, Cc): [co, di*K+dj, c]
        w = jnp.transpose(w, (0, 2, 3, 1)).reshape(cout, k * k, cc)
        w = jnp.pad(w, ((0, 0), (0, 0), (0, cc_pad - cc)))
        b = params[f"b_{gname}x"] + params[f"b_{gname}h"]          # (Cout,)
        w = w.at[:, bias_tap, cc].set(b)                            # bias column
        gates.append(w.reshape(cout, k * k * cc_pad))
    return jnp.concatenate(gates, axis=0).astype(jnp.bfloat16)


# ----------------------------------------------------------------------------
# Wrapper: layout plumbing + pallas_call
# ----------------------------------------------------------------------------
@functools.partial(jax.jit,
                   static_argnames=("kernel_size", "padding", "tm",
                                    "gate_dtype", "hide_dtype", "core_parallel"))
def convlstm_forward(x, prev_hide, prev_cell, params, kernel_size, padding,
                     tm=None, gate_dtype=jnp.float32, hide_dtype=jnp.float32,
                     core_parallel=False):
    """x: (N, Cin, H, W); prev_hide/prev_cell: (N, Cout, H, W) -> (cell, hide)."""
    N, Cin, H, W = x.shape
    Cout = prev_hide.shape[1]
    K, p = kernel_size, padding
    assert K == 2 * p + 1, "kernel implements the 'same' conv used by the module"

    Hp, Wp = H + 2 * p, W + 2 * p
    Cc = Cin + Cout
    Cc_pad = _round_up(Cc + 1, 8)        # + all-ones bias channel, sublane-aligned
    Mp = N * Hp * Wp                     # flat positions on the padded grid
    halo = p * Wp + p                    # max flat-index shift of any conv tap

    # Tile size: large tiles amortize grid overhead; shrink for tiny problems so
    # the padded tail stays small and there are >= 2 grid steps; the halo must
    # fit inside the next block (tm >= 2*halo).
    if tm is None:
        tm = min(2048, max(128, _round_up(pl.cdiv(Mp, 2), 128)))
    tm = max(tm, _round_up(max(2 * halo, 128), 128))
    assert tm % 128 == 0
    n_tiles = pl.cdiv(Mp, tm)
    Mp_pad = n_tiles * tm

    # Channel-major, spatially zero-padded, flattened x | prevHide | ones (bf16).
    xh = jnp.concatenate([x, prev_hide], axis=1)                     # (N, Cc, H, W)
    xh = jnp.pad(xh, ((0, 0), (0, 0), (p, p), (p, p)))               # (N, Cc, Hp, Wp)
    flat = jnp.transpose(xh, (1, 0, 2, 3)).reshape(Cc, Mp)
    flat = jnp.concatenate(
        [flat,
         jnp.ones((1, Mp), flat.dtype),                              # bias channel
         jnp.zeros((Cc_pad - Cc - 1, Mp), flat.dtype)], axis=0)
    flat = flat.astype(jnp.bfloat16)                                 # (Cc_pad, Mp)
    # Guard lanes: `halo` zeros on the left; pad the right so both the per-tile
    # block (i) and its halo-donor block (i+1) are always fully in bounds.
    W_ext = (n_tiles + 1) * tm
    ext = jnp.pad(flat, ((0, 0), (halo, W_ext - halo - Mp)))         # (Cc_pad, W_ext)

    # prevCell on the same padded flat grid (stays f32).
    cpad = jnp.pad(prev_cell, ((0, 0), (0, 0), (p, p), (p, p)))
    c_flat = jnp.transpose(cpad, (1, 0, 2, 3)).reshape(Cout, Mp)
    c_flat = jnp.pad(c_flat, ((0, 0), (0, Mp_pad - Mp)))

    w_all = _pack_weights(params, K, Cin, Cout, Cc_pad, bias_tap=p * K + p)

    # Flat-index shift of tap (di, dj) relative to the haloed slab start.
    offsets = tuple(di * Wp + dj for di in range(K) for dj in range(K))
    kernel = functools.partial(_convlstm_kernel, offsets=offsets, tm=tm,
                               halo=halo, gate_dtype=gate_dtype)

    # core_parallel=True shards the grid across v7x's 2 TensorCores.
    sem = pltpu.CORE_PARALLEL if core_parallel else "parallel"

    cell_flat, hide_flat = pl.pallas_call(
        kernel,
        out_shape=(
            jax.ShapeDtypeStruct((Cout, Mp_pad), jnp.float32),
            jax.ShapeDtypeStruct((Cout, Mp_pad), hide_dtype),
        ),
        grid_spec=pltpu.PrefetchScalarGridSpec(
            num_scalar_prefetch=0,
            grid=(n_tiles,),
            in_specs=[
                pl.BlockSpec((Cc_pad, tm), lambda i: (0, i)),          # this tile
                pl.BlockSpec((Cc_pad, tm), lambda i: (0, i + 1)),      # halo donor
                pl.BlockSpec((4 * Cout, K * K * Cc_pad), lambda i: (0, 0)),  # weights
                pl.BlockSpec((Cout, tm), lambda i: (0, i)),            # prevCell
            ],
            out_specs=[
                pl.BlockSpec((Cout, tm), lambda i: (0, i)),
                pl.BlockSpec((Cout, tm), lambda i: (0, i)),
            ],
        ),
        compiler_params=pltpu.CompilerParams(
            dimension_semantics=(sem,),
            vmem_limit_bytes=32 * 1024 * 1024),
    )(ext, ext, w_all, c_flat)

    def unflat(y):  # (C, Mp_pad) -> (N, C, H, W)
        y = y[:, :Mp].reshape(y.shape[0], N, Hp, Wp)[:, :, p:p + H, p:p + W]
        return jnp.transpose(y, (1, 0, 2, 3))

    return unflat(cell_flat), unflat(hide_flat)


def pick_gate_dtype():
    """bf16 gate math only on chips with native bf16 VPU/EUP (v6e / v7x)."""
    try:
        kind = jax.devices()[0].device_kind.lower()
    except Exception:
        return jnp.float32
    if any(t in kind for t in ("v2", "v3", "v4", "v5")):
        return jnp.float32
    return jnp.bfloat16


# ----------------------------------------------------------------------------
# Plain-JAX reference (mirrors the PyTorch forward) for a sanity check.
# ----------------------------------------------------------------------------
def _conv2d_nchw(x, w, b, pad):
    out = jax.lax.conv_general_dilated(
        x, w, window_strides=(1, 1), padding=[(pad, pad), (pad, pad)],
        dimension_numbers=("NCHW", "OIHW", "NCHW"))
    return out + b[None, :, None, None]


def convlstm_reference(x, prev_hide, prev_cell, params, padding):
    gt = jnp.tanh(_conv2d_nchw(x, params["w_gx"], params["b_gx"], padding)
                  + _conv2d_nchw(prev_hide, params["w_gh"], params["b_gh"], padding))
    ot = jax.nn.sigmoid(_conv2d_nchw(x, params["w_ox"], params["b_ox"], padding)
                        + _conv2d_nchw(prev_hide, params["w_oh"], params["b_oh"], padding))
    it = jax.nn.sigmoid(_conv2d_nchw(x, params["w_ix"], params["b_ix"], padding)
                        + _conv2d_nchw(prev_hide, params["w_ih"], params["b_ih"], padding))
    ft = jax.nn.sigmoid(_conv2d_nchw(x, params["w_fx"], params["b_fx"], padding)
                        + _conv2d_nchw(prev_hide, params["w_fh"], params["b_fh"], padding))
    cell = ft * prev_cell + it * gt
    hide = ot * jnp.tanh(cell)
    return cell, hide


# ----------------------------------------------------------------------------
# Deterministic parameter init (PyTorch-default-style uniform)
# ----------------------------------------------------------------------------
def init_params(key, inplanes, planes, k):
    params = {}
    names = [("gx", inplanes), ("ix", inplanes), ("ox", inplanes), ("fx", inplanes),
             ("gh", planes), ("ih", planes), ("oh", planes), ("fh", planes)]
    keys = jax.random.split(key, 2 * len(names))
    for idx, (name, cin) in enumerate(names):
        bound = 1.0 / np.sqrt(cin * k * k)
        wk, bk = keys[2 * idx], keys[2 * idx + 1]
        params[f"w_{name}"] = jax.random.uniform(
            wk, (planes, cin, k, k), jnp.float32, -bound, bound)
        params[f"b_{name}"] = jax.random.uniform(
            bk, (planes,), jnp.float32, -bound, bound)
    return params


if __name__ == "__main__":
    # Small shapes consistent with the module: LSTM(inplanes=4, planes=8, k=3, pad=1)
    N, Cin, Cout, H, W = 2, 4, 8, 16, 16
    K, PAD = 3, 1

    key = jax.random.PRNGKey(0)
    kx, kh, kc, kp = jax.random.split(key, 4)
    x = jax.random.normal(kx, (N, Cin, H, W), jnp.float32)
    prev_hide = jax.random.normal(kh, (N, Cout, H, W), jnp.float32)
    prev_cell = jax.random.normal(kc, (N, Cout, H, W), jnp.float32)
    params = init_params(kp, Cin, Cout, K)

    gate_dtype = pick_gate_dtype()
    cell, hide = convlstm_forward(x, prev_hide, prev_cell, params,
                                  kernel_size=K, padding=PAD,
                                  gate_dtype=gate_dtype)
    jax.block_until_ready((cell, hide))

    cell_ref, hide_ref = convlstm_reference(x, prev_hide, prev_cell, params, PAD)
    # bf16 matmul streams (+ optional bf16 gate math on v6e/v7x) vs. f32 reference.
    tol = 2.5e-2 if gate_dtype == jnp.float32 else 4e-2
    np.testing.assert_allclose(np.asarray(cell), np.asarray(cell_ref),
                               rtol=tol, atol=tol)
    np.testing.assert_allclose(np.asarray(hide), np.asarray(hide_ref),
                               rtol=tol, atol=tol)

    print("KERNEL_OK")
</pallas_src>

<mosaic_0001>
module attributes {stable_mosaic.version = 11 : i64} {
  func.func @_convlstm_kernel(%arg0: i32, %arg1: memref<16x384xbf16, #tpu.memory_space<vmem>>, %arg2: memref<16x384xbf16, #tpu.memory_space<vmem>>, %arg3: memref<32x144xbf16, #tpu.memory_space<vmem>>, %arg4: memref<8x384xf32, #tpu.memory_space<vmem>>, %arg5: memref<8x384xf32, #tpu.memory_space<vmem>>, %arg6: memref<8x384xf32, #tpu.memory_space<vmem>>) attributes {dimension_semantics = [#tpu.dimension_semantics<parallel>], iteration_bounds = array<i64: 2>, scalar_prefetch = 0 : i64, scratch_operands = 0 : i64, tpu.core_type = #tpu.core_type<tc>, window_params = [{transform_indices = @transform_0, window_bounds = array<i64: 16, 384>}, {transform_indices = @transform_1, window_bounds = array<i64: 16, 384>}, {pipeline_mode = #tpu.pipeline_mode<synchronous>, transform_indices = @transform_2, window_bounds = array<i64: 32, 144>}, {transform_indices = @transform_3, window_bounds = array<i64: 8, 384>}, {transform_indices = @transform_4, window_bounds = array<i64: 8, 384>}, {transform_indices = @transform_5, window_bounds = array<i64: 8, 384>}]} {
    %c0 = arith.constant 0 : index
    %c0_0 = arith.constant 0 : index
    %0 = vector.load %arg1[%c0, %c0_0] : memref<16x384xbf16, #tpu.memory_space<vmem>>, vector<16x384xbf16>
    %c0_1 = arith.constant 0 : index
    %c0_2 = arith.constant 0 : index
    %1 = vector.load %arg2[%c0_1, %c0_2] : memref<16x384xbf16, #tpu.memory_space<vmem>>, vector<16x38xbf16>
    %2 = tpu.concatenate %0, %1 in 1 : vector<16x384xbf16>, vector<16x38xbf16> -> vector<16x422xbf16>
    %3 = vector.extract_strided_slice %2 {offsets = [0, 0], sizes = [16, 384], strides = [1, 1]} : vector<16x422xbf16> to vector<16x384xbf16>
    %4 = vector.extract_strided_slice %2 {offsets = [0, 1], sizes = [16, 384], strides = [1, 1]} : vector<16x422xbf16> to vector<16x384xbf16>
    %5 = vector.extract_strided_slice %2 {offsets = [0, 2], sizes = [16, 384], strides = [1, 1]} : vector<16x422xbf16> to vector<16x384xbf16>
    %6 = vector.extract_strided_slice %2 {offsets = [0, 18], sizes = [16, 384], strides = [1, 1]} : vector<16x422xbf16> to vector<16x384xbf16>
    %7 = vector.extract_strided_slice %2 {offsets = [0, 19], sizes = [16, 384], strides = [1, 1]} : vector<16x422xbf16> to vector<16x384xbf16>
    %8 = vector.extract_strided_slice %2 {offsets = [0, 20], sizes = [16, 384], strides = [1, 1]} : vector<16x422xbf16> to vector<16x384xbf16>
    %9 = vector.extract_strided_slice %2 {offsets = [0, 36], sizes = [16, 384], strides = [1, 1]} : vector<16x422xbf16> to vector<16x384xbf16>
    %10 = vector.extract_strided_slice %2 {offsets = [0, 37], sizes = [16, 384], strides = [1, 1]} : vector<16x422xbf16> to vector<16x384xbf16>
    %11 = vector.extract_strided_slice %2 {offsets = [0, 38], sizes = [16, 384], strides = [1, 1]} : vector<16x422xbf16> to vector<16x384xbf16>
    %12 = tpu.concatenate %3, %4, %5, %6, %7, %8, %9, %10, %11 in 0 : vector<16x384xbf16>, vector<16x384xbf16>, vector<16x384xbf16>, vector<16x384xbf16>, vector<16x384xbf16>, vector<16x384xbf16>, vector<16x384xbf16>, vector<16x384xbf16>, vector<16x384xbf16> -> vector<144x384xbf16>
    %c0_3 = arith.constant 0 : index
    %c0_4 = arith.constant 0 : index
    %13 = vector.load %arg3[%c0_3, %c0_4] : memref<32x144xbf16, #tpu.memory_space<vmem>>, vector<32x144xbf16>
    %cst = arith.constant dense<0.000000e+00> : vector<32x384xf32>
    %14 = tpu.matmul %13, %12, %cst {dimension_numbers = #tpu.dot_dimension_numbers<[1], [0], [0], [1], [0, 0, 1, 1], [], []>} : vector<32x144xbf16>, vector<144x384xbf16>, vector<32x384xf32> -> vector<32x384xf32>
    %15 = vector.extract_strided_slice %14 {offsets = [0, 0], sizes = [8, 384], strides = [1, 1]} : vector<32x384xf32> to vector<8x384xf32>
    %16 = arith.truncf %15 : vector<8x384xf32> to vector<8x384xbf16>
    %17 = vector.extract_strided_slice %14 {offsets = [8, 0], sizes = [8, 384], strides = [1, 1]} : vector<32x384xf32> to vector<8x384xf32>
    %18 = arith.truncf %17 : vector<8x384xf32> to vector<8x384xbf16>
    %19 = vector.extract_strided_slice %14 {offsets = [16, 0], sizes = [8, 384], strides = [1, 1]} : vector<32x384xf32> to vector<8x384xf32>
    %20 = arith.truncf %19 : vector<8x384xf32> to vector<8x384xbf16>
    %21 = vector.extract_strided_slice %14 {offsets = [24, 0], sizes = [8, 384], strides = [1, 1]} : vector<32x384xf32> to vector<8x384xf32>
    %22 = arith.truncf %21 : vector<8x384xf32> to vector<8x384xbf16>
    %23 = math.tanh %16 : vector<8x384xbf16>
    %24 = arith.negf %18 : vector<8x384xbf16>
    %25 = math.exp %24 : vector<8x384xbf16>
    %cst_5 = arith.constant 1.000000e+00 : bf16
    %26 = vector.broadcast %cst_5 : bf16 to vector<8x384xbf16>
    %27 = arith.addf %26, %25 : vector<8x384xbf16>
    %28 = arith.divf %26, %27 : vector<8x384xbf16>
    %29 = arith.negf %20 : vector<8x384xbf16>
    %30 = math.exp %29 : vector<8x384xbf16>
    %cst_6 = arith.constant 1.000000e+00 : bf16
    %31 = vector.broadcast %cst_6 : bf16 to vector<8x384xbf16>
    %32 = arith.addf %31, %30 : vector<8x384xbf16>
    %33 = arith.divf %31, %32 : vector<8x384xbf16>
    %34 = arith.negf %22 : vector<8x384xbf16>
    %35 = math.exp %34 : vector<8x384xbf16>
    %cst_7 = arith.constant 1.000000e+00 : bf16
    %36 = vector.broadcast %cst_7 : bf16 to vector<8x384xbf16>
    %37 = arith.addf %36, %35 : vector<8x384xbf16>
    %38 = arith.divf %36, %37 : vector<8x384xbf16>
    %39 = arith.extf %38 : vector<8x384xbf16> to vector<8x384xf32>
    %c0_8 = arith.constant 0 : index
    %c0_9 = arith.constant 0 : index
    %40 = vector.load %arg4[%c0_8, %c0_9] : memref<8x384xf32, #tpu.memory_space<vmem>>, vector<8x384xf32>
    %41 = arith.mulf %39, %40 : vector<8x384xf32>
    %42 = arith.mulf %33, %23 : vector<8x384xbf16>
    %43 = arith.extf %42 : vector<8x384xbf16> to vector<8x384xf32>
    %44 = arith.addf %41, %43 : vector<8x384xf32>
    %c0_10 = arith.constant 0 : index
    %c0_11 = arith.constant 0 : index
    %45 = vector.load %arg5[%c0_10, %c0_11] : memref<8x384xf32, #tpu.memory_space<vmem>>, vector<8x384xf32>
    tpu.vector_store %arg5[%c0_10, %c0_11], %44 {strides = array<i32>} : memref<8x384xf32, #tpu.memory_space<vmem>>, vector<8x384xf32>,
    %46 = arith.extf %28 : vector<8x384xbf16> to vector<8x384xf32>
    %47 = math.tanh %44 : vector<8x384xf32>
    %48 = arith.mulf %46, %47 : vector<8x384xf32>
    %c0_12 = arith.constant 0 : index
    %c0_13 = arith.constant 0 : index
    %49 = vector.load %arg6[%c0_12, %c0_13] : memref<8x384xf32, #tpu.memory_space<vmem>>, vector<8x384xf32>
    tpu.vector_store %arg6[%c0_12, %c0_13], %48 {strides = array<i32>} : memref<8x384xf32, #tpu.memory_space<vmem>>, vector<8x384xf32>,
    return
  }
  func.func @transform_0(%arg0: i32) -> (i32, i32) {
    %c0_i32 = arith.constant 0 : i32
    %c0_i32_0 = arith.constant 0 : i32
    return %c0_i32, %arg0 : i32, i32
  }
  func.func @transform_1(%arg0: i32) -> (i32, i32) {
    %c1_i32 = arith.constant 1 : i32
    %0 = arith.addi %arg0, %c1_i32 : i32
    %c0_i32 = arith.constant 0 : i32
    %c0_i32_0 = arith.constant 0 : i32
    return %c0_i32, %0 : i32, i32
  }
  func.func @transform_2(%arg0: i32) -> (i32, i32) {
    %c0_i32 = arith.constant 0 : i32
    %c0_i32_0 = arith.constant 0 : i32
    %c0_i32_1 = arith.constant 0 : i32
    return %c0_i32, %c0_i32_0 : i32, i32
  }
  func.func @transform_3(%arg0: i32) -> (i32, i32) {
    %c0_i32 = arith.constant 0 : i32
    %c0_i32_0 = arith.constant 0 : i32
    return %c0_i32, %arg0 : i32, i32
  }
  func.func @transform_4(%arg0: i32) -> (i32, i32) {
    %c0_i32 = arith.constant 0 : i32
    %c0_i32_0 = arith.constant 0 : i32
    return %c0_i32, %arg0 : i32, i32
  }
  func.func @transform_5(%arg0: i32) -> (i32, i32) {
    %c0_i32 = arith.constant 0 : i32
    %c0_i32_0 = arith.constant 0 : i32
    return %c0_i32, %arg0 : i32, i32
  }
}

</mosaic_0001>

<bundles_post_ra>
// kernel: convlstm_forward.1
= control target key start
LH: loop header
LB: loop body
LE: loop exit
PB: predicated region body
PF: predicated region fallthrough
CT: control target
= control target key end

     0   :  { %s1119_s18 = smov 0   ;;  %s1121_s19 = smov 0   ;;  %s1243_s0 = inlined_call_operand.vmem [shape: bf16[16,1152], index: 0, kind: input, shape index: {}, may-alias: {0,1}]   ;;  %s1244_s1 = inlined_call_operand.vmem [shape: bf16[16,1152], index: 1, kind: input, shape index: {}, may-alias: {0,1}]   ;;  %s1245_s2 = inlined_call_operand.vmem [shape: bf16[32,144], index: 2, kind: input, shape index: {}]   ;;  %s1246_s3 = inlined_call_operand.vmem [shape: f32[8,768], index: 3, kind: input, shape index: {}]   ;;  %s1247_s4 = inlined_call_operand.vmem [shape: f32[8,768], index: 4, kind: output, shape index: {0}]   ;;  %s1248_s5 = inlined_call_operand.vmem [shape: f32[8,768], index: 5, kind: output, shape index: {1}]  }
   0x1   :  { %s1123_s20 = smov 0   ;;  %s1125_s21 = smov 0  }
   0x2   :  { %s1127_s22 = smov 0  }
   0x3 LB: > { %s885_s23 = sadd.s32 4294967295, %s1078_s22   ;;  %s1146_s24 = sadd.s32 1, %s1078_s22   ;;  %s1078_s22 = sphi %s1127_s22, %s1254_s22   ;;  %s1074_s21 = sphi %s1125_s21, %s1253_s21   ;;  %s1070_s20 = sphi %s1123_s20, %s1252_s20   ;;  %s1066_s19 = sphi %s1121_s19, %s1251_s19   ;;  %s1062_s18 = sphi %s1119_s18, %s1250_s18  }
   0x4   : > { %s20_s25 = ssub.s32 %s1078_s22, %s1146_s24  ;;  %s23_s26 = sadd.s32 1, %s1074_s21 }
   0x5   : > { %p21_p0 = scmp.eq.s32.totalorder %s20_s25, 0  ;;  %p30_p1 = scmp.ne.s32.totalorder %s1074_s21, %s1070_s20 }
   0x6   : > { %p31_p2 = scmp.eq.s32.totalorder %s1078_s22, 0  ;;  %s47_s27 = sadd.s32 1, %s1146_s24 }
   0x7   : > { %s1156_s28 = scalar_select %p21_p0, %s1074_s21, %s23_s26  }
   0x8   : > { %p32_p3 = por %p31_p2, %p30_p1  ;;  %s48_s29 = ssub.s32 %s1146_s24, %s47_s27 }
   0x9   : > { %p49_p4 = scmp.eq.s32.totalorder %s48_s29, 0  ;;  %s51_s30 = sadd.s32 1, %s1066_s19 }
   0xa   : > { %p58_p5 = scmp.ne.s32.totalorder %s1066_s19, %s1062_s18  ;;  %p888_p7 = scmp.ge.s32.totalorder %s1078_s22, 2 }
   0xb   : > { %s1163_s6 = scalar_select %p49_p4, %s1066_s19, %s51_s30  }
   0xc   : > { %p1165_p6 = por %p58_p5, %p31_p2  ;;  %186 = sbr.rel (%p888_p7) target bundleno = 33 (0x21), region = 20 }
  0x13   : > { %189 = sbr.rel (!%p32_p3) target bundleno = 26 (0x1a), region = 24  ;;  %s191_s8 = sand.u32 (%p32_p3), 1, %s1074_s21  }
  0x14   : > { %s927_s9 = smul.u32 (%p32_p3), 12, %s1078_s22 }
  0x15   : > { %s928_s10 = smul.u32 (%p32_p3), 24, %s191_s8 }
  0x16   : > { %s196_s13 = scalar_lea.vmem (%p32_p3), %s1243_s0, %s927_s9 }
  0x17   : > { %v211_v0 = vld [vmem:[%s196_s13] sm:$0xff] (%p32_p3)  ;;  %v890_v2 = vld [vmem:[%s196_s13 + $0x8] sm:$0xf] (%p32_p3)  ;;  %s193_s14 = scalar_lea.vmem (%p32_p3), [#allocation2], %s928_s10  ;;  %v892_v3 = vld [vmem:[%s196_s13 + $0x2c] sm:$0xf] (%p32_p3) }
  0x18   : > { %v213_v1 = vld [vmem:[%s196_s13 + $0x24] sm:$0xff] (%p32_p3)  ;;  %212 = vst [vmem:[%s193_s14] sm:$0xff] (%p32_p3), %v211_v0  ;;  %891 = vst [vmem:[%s193_s14 + $0x8] sm:$0xf] (%p32_p3), %v890_v2 }
  0x19   : > { %214 = vst [vmem:[%s193_s14 + $0xc] sm:$0xff] (%p32_p3), %v213_v1  ;;  %893 = vst [vmem:[%s193_s14 + $0x14] sm:$0xf] (%p32_p3), %v892_v3 }
  0x1a PF: > { %231 = sbr.rel (!%p1165_p6) target bundleno = 33 (0x21), region = 50  ;;  %s233_s15 = sand.u32 (%p1165_p6), 1, %s1066_s19  }
  0x1b   : > { %s794_s16 = smul.u32 (%p1165_p6), 12, %s1078_s22 }
  0x1c   : > { %s929_s17 = smul.u32 (%p1165_p6), 24, %s233_s15 }
  0x1d   : > { %s795_s27 = scalar_lea.vmem (%p1165_p6), %s1244_s1, %s794_s16 }
  0x1e   : > { %v894_v4 = vld [vmem:[%s795_s27 + $0xc] sm:$0xff] (%p1165_p6)  ;;  %v896_v6 = vld [vmem:[%s795_s27 + $0x14] sm:$0xf] (%p1165_p6)  ;;  %s235_s29 = scalar_lea.vmem (%p1165_p6), [#allocation3], %s929_s17  ;;  %v898_v7 = vld [vmem:[%s795_s27 + $0x38] sm:$0xf] (%p1165_p6) }
  0x1f   : > { %v895_v5 = vld [vmem:[%s795_s27 + $0x30] sm:$0xff] (%p1165_p6)  ;;  %255 = vst [vmem:[%s235_s29] sm:$0xff] (%p1165_p6), %v894_v4  ;;  %897 = vst [vmem:[%s235_s29 + $0x8] sm:$0xf] (%p1165_p6), %v896_v6 }
  0x20   : > { %257 = vst [vmem:[%s235_s29 + $0xc] sm:$0xff] (%p1165_p6), %v895_v5  ;;  %899 = vst [vmem:[%s235_s29 + $0x14] sm:$0xf] (%p1165_p6), %v898_v7 }
  0x21 PF: > { %p900_p8 = scmp.ge.s32.totalorder %s1078_s22, 1  ;;  %p282_p9 = scmp.lt.s32.totalorder %s1078_s22, 3 }
  0x23   : > { %p283_p10 = pnand %p900_p8, %p282_p9 }
  0x24   : > { %s289_s30 = sand.u32 (!%p283_p10), 1, %s1070_s20   ;;  %s296_s8 = sand.u32 (!%p283_p10), 1, %s1062_s18   ;;  %v1080_v8 = vmov (!%p283_p10), 0   ;;  %v988_v13 = vld [vmem:[%s1245_s2 + $0x4] ss:$8 sps:$4 sm:$0xff] (!%p283_p10)   ;;  %vm529_vm0 = vcmask (!%p283_p10), 130048  }
  0x25   : > { %286 = sbr.rel (%p283_p10) target bundleno = 498 (0x1f2), region = 80  ;;  %589 = vmatprep.subr.bf16.mxu1 (!%p283_p10), %v1080_v8  ;;  %s1081_s11 = smov (!%p283_p10), 127   ;;  %912 = vmatprep.mubr.msk.bf16.mxu0 (!%p283_p10), %vm529_vm0, %v988_v13  ;;  %vm395_vm1 = vcmask (!%p283_p10), 1039360   ;;  %vm410_vm2 = vcmask (!%p283_p10), 1031168   ;;  %vm425_vm3 = vcmask (!%p283_p10), 900096   ;;  %vm440_vm4 = vcmask (!%p283_p10), 891904  }
  0x26   : > { %s930_s7 = smul.u32 (!%p283_p10), 24, %s289_s30  ;;  %s1082_s18 = smov (!%p283_p10), 126   ;;  %914 = vmatprep.mubr.msk.bf16.mxu1 (!%p283_p10), %vm529_vm0, %v988_v13  ;;  %vm455_vm5 = vcmask (!%p283_p10), 883712   ;;  %vm470_vm6 = vcmask (!%p283_p10), 752640   ;;  %vm485_vm7 = vcmask (!%p283_p10), 744448   ;;  %vm500_vm8 = vcmask (!%p283_p10), 736256  }
  0x27   : > { %s931_s9 = smul.u32 (!%p283_p10), 24, %s296_s8  ;;  %s1083_s20 = smov (!%p283_p10), 110   ;;  %v986_v5 = vld [vmem:[%s1245_s2] ss:$8 sps:$4 sm:$0xff] (!%p283_p10)   ;;  %v989_v7 = vld [vmem:[%s1245_s2 + $0x14] ss:$8 sps:$4 sm:$0xff] (!%p283_p10)  }
  0x28   : > { %s291_s10 = scalar_lea.vmem (!%p283_p10), [#allocation2], %s930_s7  ;;  %s1084_s13 = smov (!%p283_p10), 109  }
  0x29   : > { %v981_v9 = vld [vmem:[%s291_s10 + $0x4] ss:$12 sps:$4 sm:$0xff] (!%p283_p10)   ;;  %v983_v10 = vld [vmem:[%s291_s10] ss:$12 sps:$4 sm:$0xff] (!%p283_p10)   ;;  %v984_v11 = vld [vmem:[%s291_s10 + $0x8] ss:$12 sps:$4 sm:$0xff] (!%p283_p10)  }
  0x2a   : > { %389 = vrot.lane.b32.xlu0 (!%p283_p10), %v981_v9, %s1081_s11  ;;  %s298_s12 = scalar_lea.vmem (!%p283_p10), [#allocation3], %s931_s9  ;;  %536 = vmatprep.subr.bf16.mxu0 (!%p283_p10), %v981_v9  ;;  %s1085_s14 = smov (!%p283_p10), 108  }
  0x2b   : > { %387 = vrot.lane.b32.xlu1 (!%p283_p10), %v983_v10, %s1081_s11  ;;  %v985_v12 = vld [vmem:[%s298_s12] ss:$12 sps:$4 sm:$0xff] (!%p283_p10)   ;;  %537 = vmatpush1.bf16.msra.mxu0 (!%p283_p10), %v983_v10  ;;  %s1086_s15 = smov (!%p283_p10), 92   ;;  %s1087_s16 = smov (!%p283_p10), 91  }
  0x2c   : > { %590 = vmatpush1.bf16.msra.mxu1 %v984_v11  ;;  %s1088_s26 = smov 90   ;;  %s340_s10 = smul.u32 3, %s885_s23 }
  0x2d   : > { %591 = vmatprep.subr.bf16.mxu1 %v1080_v8 }
  0x2e   : > { %391 = vrot.lane.b32.xlu0 %v984_v11, %s1081_s11  ;;  %p341_p11 = scmp.lt.s32.totalorder %s340_s10, 5 }
  0x2f   : > { %393 = vrot.lane.b32.xlu1 %v985_v12, %s1081_s11 }
  0x30   : > { %s1256_s10 = smov (!%p341_p11, %s340_s10), 5 }
  0x31   : > { %s1213_s22 = sshll.u32 %s1256_s10, 3 }
  0x32   : > { %404 = vrot.lane.b32.xlu0 %v981_v9, %s1082_s18  ;;  %s344_s12 = scalar_lea.vmem %s1246_s3, %s1213_s22 }
  0x33   : > { %406 = vrot.lane.b32.xlu1 %v984_v11, %s1082_s18 }
  0x36   : > { %402 = vrot.lane.b32.xlu0 %v983_v10, %s1082_s18 }
  0x37   : > { %408 = vrot.lane.b32.xlu1 %v985_v12, %s1082_s18 }
  0x3a   : > { %419 = vrot.lane.b32.xlu0 %v981_v9, %s1083_s20 }
  0x3b   : > { %421 = vrot.lane.b32.xlu1 %v984_v11, %s1083_s20 }
  0x3e   : > { %417 = vrot.lane.b32.xlu0 %v983_v10, %s1083_s20 }
  0x3f   : > { %423 = vrot.lane.b32.xlu1 %v985_v12, %s1083_s20 }
  0x42   : > { %434 = vrot.lane.b32.xlu0 %v981_v9, %s1084_s13 }
  0x43   : > { %436 = vrot.lane.b32.xlu1 %v984_v11, %s1084_s13 }
  0x46   : > { %432 = vrot.lane.b32.xlu0 %v983_v10, %s1084_s13 }
  0x47   : > { %438 = vrot.lane.b32.xlu1 %v985_v12, %s1084_s13  ;;  %s350_s13 = scalar_lea.vmem %s1247_s4, %s1213_s22 }
  0x4a   : > { %449 = vrot.lane.b32.xlu0 %v981_v9, %s1085_s14 }
  0x4b   : > { %451 = vrot.lane.b32.xlu1 %v984_v11, %s1085_s14 }
  0x4e   : > { %447 = vrot.lane.b32.xlu0 %v983_v10, %s1085_s14 }
  0x4f   : > { %453 = vrot.lane.b32.xlu1 %v985_v12, %s1085_s14 }
  0x52   : > { %464 = vrot.lane.b32.xlu0 %v981_v9, %s1086_s15 }
  0x53   : > { %466 = vrot.lane.b32.xlu1 %v984_v11, %s1086_s15 }
  0x56   : > { %462 = vrot.lane.b32.xlu0 %v983_v10, %s1086_s15 }
  0x57   : > { %468 = vrot.lane.b32.xlu1 %v985_v12, %s1086_s15 }
  0x5a   : > { %479 = vrot.lane.b32.xlu0 %v981_v9, %s1087_s16 }
  0x5b   : > { %481 = vrot.lane.b32.xlu1 %v984_v11, %s1087_s16 }
  0x5e   : > { %477 = vrot.lane.b32.xlu0 %v983_v10, %s1087_s16 }
  0x5f   : > { %483 = vrot.lane.b32.xlu1 %v985_v12, %s1087_s16  ;;  %s356_s16 = scalar_lea.vmem %s1248_s5, %s1213_s22 }
  0x62   : > { %494 = vrot.lane.b32.xlu0 %v981_v9, %s1088_s26 }
  0x63   : > { %496 = vrot.lane.b32.xlu1 %v984_v11, %s1088_s26 }
  0x66   : > { %492 = vrot.lane.b32.xlu0 %v983_v10, %s1088_s26 }
  0x67   : > { %498 = vrot.lane.b32.xlu1 %v985_v12, %s1088_s26 }
  0x9c   : > { %v390_v14 = vpop.permute.xlu0 %389 }
  0x9d   : > { %v388_v15 = vpop.permute.xlu1 %387 }
  0x9e   : > { %v396_v20 = vsel %vm395_vm1, %v388_v15, %v390_v14 }
  0xa0   : > { %v392_v16 = vpop.permute.xlu0 %391 }
  0xa1   : > { %v394_v17 = vpop.permute.xlu1 %393  ;;  %v397_v18 = vsel %vm395_vm1, %v390_v14, %v392_v16 }
  0xa2   : > { %538 = vmatprep.subr.bf16.mxu0 %v397_v18  ;;  %v398_v19 = vsel %vm395_vm1, %v392_v16, %v394_v17 }
  0xa3   : > { %592 = vmatpush1.bf16.msra.mxu1 %v398_v19  ;;  %539 = vmatpush1.bf16.msra.mxu0 %v396_v20 }
  0xa4   : > { %v405_v21 = vpop.permute.xlu0 %404  ;;  %593 = vmatprep.subr.bf16.mxu1 %v1080_v8 }
  0xa5   : > { %v407_v22 = vpop.permute.xlu1 %406 }
  0xa6   : > { %v412_v23 = vsel %vm410_vm2, %v405_v21, %v407_v22 }
  0xa7   : > { %540 = vmatprep.subr.bf16.mxu0 %v412_v23 }
  0xa8   : > { %v403_v24 = vpop.permute.xlu0 %402 }
  0xa9   : > { %v409_v25 = vpop.permute.xlu1 %408  ;;  %v411_v26 = vsel %vm410_vm2, %v403_v24, %v405_v21 }
  0xaa   : > { %541 = vmatpush1.bf16.msra.mxu0 %v411_v26  ;;  %v413_v27 = vsel %vm410_vm2, %v407_v22, %v409_v25 }
  0xab   : > { %594 = vmatpush1.bf16.msra.mxu1 %v413_v27 }
  0xac   : > { %v420_v28 = vpop.permute.xlu0 %419  ;;  %595 = vmatprep.subr.bf16.mxu1 %v1080_v8 }
  0xad   : > { %v422_v29 = vpop.permute.xlu1 %421 }
  0xae   : > { %v427_v30 = vsel %vm425_vm3, %v420_v28, %v422_v29 }
  0xaf   : > { %542 = vmatprep.subr.bf16.mxu0 %v427_v30 }
  0xb0   : > { %v418_v31 = vpop.permute.xlu0 %417 }
  0xb1   : > { %v424_v32 = vpop.permute.xlu1 %423  ;;  %v426_v33 = vsel %vm425_vm3, %v418_v31, %v420_v28 }
  0xb2   : > { %543 = vmatpush1.bf16.msra.mxu0 %v426_v33  ;;  %v428_v34 = vsel %vm425_vm3, %v422_v29, %v424_v32 }
  0xb3   : > { %596 = vmatpush1.bf16.msra.mxu1 %v428_v34 }
  0xb4   : > { %v435_v35 = vpop.permute.xlu0 %434  ;;  %597 = vmatprep.subr.bf16.mxu1 %v1080_v8 }
  0xb5   : > { %v437_v36 = vpop.permute.xlu1 %436 }
  0xb6   : > { %v442_v37 = vsel %vm440_vm4, %v435_v35, %v437_v36 }
  0xb7   : > { %544 = vmatprep.subr.bf16.mxu0 %v442_v37 }
  0xb8   : > { %v433_v38 = vpop.permute.xlu0 %432 }
  0xb9   : > { %v439_v39 = vpop.permute.xlu1 %438  ;;  %v441_v40 = vsel %vm440_vm4, %v433_v38, %v435_v35 }
  0xba   : > { %545 = vmatpush1.bf16.msra.mxu0 %v441_v40  ;;  %v443_v41 = vsel %vm440_vm4, %v437_v36, %v439_v39 }
  0xbb   : > { %598 = vmatpush1.bf16.msra.mxu1 %v443_v41 }
  0xbc   : > { %v450_v42 = vpop.permute.xlu0 %449  ;;  %599 = vmatprep.subr.bf16.mxu1 %v1080_v8 }
  0xbd   : > { %v452_v43 = vpop.permute.xlu1 %451 }
  0xbe   : > { %v457_v44 = vsel %vm455_vm5, %v450_v42, %v452_v43 }
  0xbf   : > { %546 = vmatprep.subr.bf16.mxu0 %v457_v44 }
  0xc0   : > { %v448_v45 = vpop.permute.xlu0 %447 }
  0xc1   : > { %v454_v46 = vpop.permute.xlu1 %453  ;;  %v456_v47 = vsel %vm455_vm5, %v448_v45, %v450_v42 }
  0xc2   : > { %547 = vmatpush1.bf16.msra.mxu0 %v456_v47  ;;  %v458_v48 = vsel %vm455_vm5, %v452_v43, %v454_v46 }
  0xc3   : > { %600 = vmatpush1.bf16.msra.mxu1 %v458_v48 }
  0xc4   : > { %v465_v49 = vpop.permute.xlu0 %464  ;;  %601 = vmatprep.subr.bf16.mxu1 %v1080_v8 }
  0xc5   : > { %v467_v50 = vpop.permute.xlu1 %466 }
  0xc6   : > { %v472_v51 = vsel %vm470_vm6, %v465_v49, %v467_v50 }
  0xc7   : > { %548 = vmatprep.subr.bf16.mxu0 %v472_v51 }
  0xc8   : > { %v463_v52 = vpop.permute.xlu0 %462 }
  0xc9   : > { %v469_v53 = vpop.permute.xlu1 %468  ;;  %v471_v54 = vsel %vm470_vm6, %v463_v52, %v465_v49 }
  0xca   : > { %549 = vmatpush1.bf16.msra.mxu0 %v471_v54  ;;  %v473_v55 = vsel %vm470_vm6, %v467_v50, %v469_v53 }
  0xcb   : > { %602 = vmatpush1.bf16.msra.mxu1 %v473_v55 }
  0xcc   : > { %v480_v56 = vpop.permute.xlu0 %479  ;;  %603 = vmatprep.subr.bf16.mxu1 %v1080_v8 }
  0xcd   : > { %v482_v57 = vpop.permute.xlu1 %481 }
  0xce   : > { %v487_v58 = vsel %vm485_vm7, %v480_v56, %v482_v57 }
  0xcf   : > { %550 = vmatprep.subr.bf16.mxu0 %v487_v58 }
  0xd0   : > { %v478_v59 = vpop.permute.xlu0 %477 }
  0xd1   : > { %v484_v60 = vpop.permute.xlu1 %483  ;;  %v486_v61 = vsel %vm485_vm7, %v478_v59, %v480_v56 }
  0xd2   : > { %551 = vmatpush1.bf16.msra.mxu0 %v486_v61  ;;  %v488_v62 = vsel %vm485_vm7, %v482_v57, %v484_v60 }
  0xd3   : > { %604 = vmatpush1.bf16.msra.mxu1 %v488_v62 }
  0xd4   : > { %v495_v63 = vpop.permute.xlu0 %494  ;;  %605 = vmatprep.subr.bf16.mxu1 %v1080_v8  ;;  %v991_v8 = vld [vmem:[%s1245_s2 + $0x10] ss:$8 sps:$4 sm:$0xff]  }
  0xd5   : > { %v497_v0 = vpop.permute.xlu1 %496 }
  0xd6   : > { %v502_v1 = vsel %vm500_vm8, %v495_v63, %v497_v0 }
  0xd7   : > { %552 = vmatprep.subr.bf16.mxu0 %v502_v1 }
  0xd8   : > { %v493_v2 = vpop.permute.xlu0 %492 }
  0xd9   : > { %v499_v3 = vpop.permute.xlu1 %498  ;;  %v501_v4 = vsel %vm500_vm8, %v493_v2, %v495_v63 }
  0xda   : > { %553 = vmatpush1.bf16.msra.mxu0 %v501_v4  ;;  %v503_v6 = vsel %vm500_vm8, %v497_v0, %v499_v3 }
  0xdb   : > { %606 = vmatpush1.bf16.msra.mxu1 %v503_v6 }
  0xdd   : > { %569 = vmatmul.mubr.bf16.vlgmr.msra.gmra.mrb[0].mxu0 %v986_v5 }
  0xde   : > { %622 = vmatmul.mubr.bf16.vlgmr.msra.gmra.mrb[0].mxu1 %v986_v5  ;;  %913 = vmatprep.mubr.msk.bf16.mxu0 %vm529_vm0, %v989_v7 }
  0xdf   : > { %915 = vmatprep.mubr.msk.bf16.mxu1 %vm529_vm0, %v989_v7 }
  0xe5   : > { %579 = vmatmul.mubr.bf16.gmra.mrb[4].mxu0 %v991_v8 }
  0xe6   : > { %630 = vmatmul.mubr.bf16.gmra.mrb[4].mxu1 %v991_v8 }
 0x1b0   : > { %v570_v9 = vpop.f32.mrb[0].mxu0 }
 0x1b1   : > { %v623_v10 = vpop.f32.mrb[0].mxu1  ;;  %v572_v11 = vpop.f32.mrb[1].mxu0  ;;  %v638_v39 = vpack.c.bf16 %v570_v9, %v570_v9 }
 0x1b2   : > { %v625_v12 = vpop.f32.mrb[1].mxu1  ;;  %v574_v13 = vpop.f32.mrb[2].mxu0  ;;  %v640_v41 = vpack.c.bf16 %v623_v10, %v623_v10  ;;  %v639_v45 = vpack.c.bf16 %v572_v11, %v572_v11 }
 0x1b3   : > { %v626_v14 = vpop.f32.mrb[2].mxu1  ;;  %v576_v15 = vpop.f32.mrb[3].mxu0  ;;  %v641_v37 = vpack.c.bf16 %v574_v13, %v574_v13 }
 0x1b4   : > { %v628_v16 = vpop.f32.mrb[3].mxu1  ;;  %v643_v38 = vpack.c.bf16 %v626_v14, %v626_v14  ;;  %v642_v40 = vpack.c.bf16 %v576_v15, %v576_v15 }
 0x1b5   : > { %v916_v42 = vmul.bf16 3216621497, %v641_v37  ;;  %v719_v16 = vld [vmem:[%s344_s12] sm:$0xff] }
 0x1b6   : > { %v918_v43 = vmul.bf16 3216621497, %v643_v38  ;;  %v917_v44 = vmul.bf16 3216621497, %v642_v40 }
 0x1b8   : > { %v580_v17 = vpop.f32.mrb[4].mxu0 }
 0x1b9   : > { %v644_v18 = vpack.c.bf16 %v580_v17, %v580_v17  ;;  %v631_v19 = vpop.f32.mrb[4].mxu1  ;;  %v582_v20 = vpop.f32.mrb[5].mxu0 }
 0x1ba   : > { %v646_v21 = vpack.c.bf16 %v631_v19, %v631_v19  ;;  %v645_v22 = vpack.c.bf16 %v582_v20, %v582_v20  ;;  %v633_v23 = vpop.f32.mrb[5].mxu1  ;;  %v584_v24 = vpop.f32.mrb[6].mxu0  ;;  %v721_v19 = vld [vmem:[%s344_s12 + $0x10] sm:$0xff] }
 0x1bb   : > { %v919_v25 = vmul.bf16 3216621497, %v644_v18  ;;  %v647_v26 = vpack.c.bf16 %v584_v24, %v584_v24  ;;  %v634_v27 = vpop.f32.mrb[6].mxu1  ;;  %v586_v28 = vpop.f32.mrb[7].mxu0 }
 0x1bc   : > { %v921_v29 = vmul.bf16 3216621497, %v646_v21  ;;  %v920_v30 = vmul.bf16 3216621497, %v645_v22  ;;  %v649_v31 = vpack.c.bf16 %v634_v27, %v634_v27  ;;  %v648_v32 = vpack.c.bf16 %v586_v28, %v586_v28  ;;  %v636_v33 = vpop.f32.mrb[7].mxu1  ;;  %v720_v22 = vld [vmem:[%s344_s12 + $0x8] sm:$0xff] }
 0x1bd   : > { %992 = vpow.bf16 %v919_v25  ;;  %v922_v34 = vmul.bf16 3216621497, %v647_v26 }
 0x1be   : > { %994 = vpow.bf16 %v921_v29  ;;  %v924_v35 = vmul.bf16 3216621497, %v649_v31  ;;  %v923_v36 = vmul.bf16 3216621497, %v648_v32 }
 0x1bf   : > { %996 = vpow.bf16 %v920_v30 }
 0x1c0   : > { %998 = vpow.bf16 %v922_v34 }
 0x1c1   : > { %1000 = vpow.bf16 %v924_v35 }
 0x1c2   : > { %1002 = vpow.bf16 %v923_v36 }
 0x1c3   : > { %1004 = vtanh.bf16 %v638_v39 }
 0x1c4   : > { %1006 = vtanh.bf16 %v640_v41 }
 0x1c5   : > { %1008 = vpow.bf16 %v916_v42 }
 0x1c6   : > { %1010 = vpow.bf16 %v918_v43 }
 0x1c7   : > { %1012 = vpow.bf16 %v917_v44 }
 0x1c8   : > { %v993_v46 = vpop.eup %992  ;;  %1014 = vtanh.bf16 %v639_v45 }
 0x1c9   : > { %v995_v47 = vpop.eup %994  ;;  %v686_v48 = vadd.bf16 1065369472, %v993_v46 }
 0x1ca   : > { %v997_v49 = vpop.eup %996  ;;  %v688_v50 = vadd.bf16 1065369472, %v995_v47 }
 0x1cb   : > { %v999_v51 = vpop.eup %998  ;;  %1016 = vrcp.bf16 %v686_v48  ;;  %v687_v52 = vadd.bf16 1065369472, %v997_v49 }
 0x1cc   : > { %v1001_v53 = vpop.eup %1000  ;;  %1018 = vrcp.bf16 %v688_v50  ;;  %v707_v54 = vadd.bf16 1065369472, %v999_v51 }
 0x1cd   : > { %v1003_v55 = vpop.eup %1002  ;;  %1020 = vrcp.bf16 %v687_v52  ;;  %v709_v56 = vadd.bf16 1065369472, %v1001_v53 }
 0x1ce   : > { %1022 = vrcp.bf16 %v707_v54  ;;  %v708_v57 = vadd.bf16 1065369472, %v1003_v55  ;;  %v1005_v58 = vpop.eup %1004 }
 0x1cf   : > { %1024 = vrcp.bf16 %v709_v56  ;;  %v1007_v59 = vpop.eup %1006 }
 0x1d0   : > { %1026 = vrcp.bf16 %v708_v57  ;;  %v1009_v60 = vpop.eup %1008 }
 0x1d1   : > { %v1011_v61 = vpop.eup %1010  ;;  %v665_v0 = vadd.bf16 1065369472, %v1009_v60 }
 0x1d2   : > { %v1013_v62 = vpop.eup %1012  ;;  %v667_v2 = vadd.bf16 1065369472, %v1011_v61 }
 0x1d3   : > { %v1015_v63 = vpop.eup %1014  ;;  %v666_v4 = vadd.bf16 1065369472, %v1013_v62  ;;  %1028 = vrcp.bf16 %v665_v0 }
 0x1d4   : > { %1030 = vrcp.bf16 %v667_v2 }
 0x1d5   : > { %1032 = vrcp.bf16 %v666_v4 }
 0x1d6   : > { %v1017_v1 = vpop.eup %1016 }
 0x1d7   : > { %v1019_v3 = vpop.eup %1018  ;;  %v690_v5 = vmul.bf16 1065369472, %v1017_v1 }
 0x1d8   : > { %v1021_v6 = vpop.eup %1020  ;;  %v694_v7 = vmul.bf16 1065369472, %v1019_v3 }
 0x1d9   : > { %v1023_v8 = vpop.eup %1022  ;;  %v725_v9 = vmul.bf16 %v1005_v58, %v690_v5  ;;  %v692_v10 = vmul.bf16 1065369472, %v1021_v6 }
 0x1da   : > { %v1025_v11 = vpop.eup %1024  ;;  %v727_v12 = vmul.bf16 %v1007_v59, %v694_v7  ;;  %v711_v13 = vmul.bf16 1065369472, %v1023_v8 }
 0x1db   : > { %v1027_v14 = vpop.eup %1026  ;;  %v726_v15 = vmul.bf16 %v1015_v63, %v692_v10  ;;  %v715_v17 = vmul.bf16 1065369472, %v1025_v11  ;;  %v728_v23 = vunpack.c.l.bf16 %v725_v9 }
 0x1dc   : > { %v716_v18 = vunpack.c.l.bf16 %v711_v13  ;;  %v713_v20 = vmul.bf16 1065369472, %v1027_v14  ;;  %v730_v26 = vunpack.c.l.bf16 %v727_v12 }
 0x1dd   : > { %v718_v21 = vunpack.c.l.bf16 %v715_v17  ;;  %v729_v28 = vunpack.c.l.bf16 %v726_v15 }
 0x1de   : > { %v722_v24 = vmul.f32 %v719_v16, %v716_v18  ;;  %v717_v25 = vunpack.c.l.bf16 %v713_v20  ;;  %v1029_v33 = vpop.eup %1028 }
 0x1df   : > { %v724_v27 = vmul.f32 %v721_v19, %v718_v21  ;;  %v1031_v34 = vpop.eup %1030  ;;  %v669_v36 = vmul.bf16 1065369472, %v1029_v33 }
 0x1e0   : > { %v731_v29 = vadd.f32 %v728_v23, %v722_v24  ;;  %v723_v30 = vmul.f32 %v720_v22, %v717_v25  ;;  %v1033_v35 = vpop.eup %1032  ;;  %v673_v37 = vmul.bf16 1065369472, %v1031_v34 }
 0x1e1   : > { %v733_v31 = vadd.f32 %v730_v26, %v724_v27  ;;  %v671_v38 = vmul.bf16 1065369472, %v1033_v35  ;;  %v737_v39 = vunpack.c.l.bf16 %v669_v36 }
 0x1e2   : > { %734 = vst [vmem:[%s350_s13] sm:$0xff] %v731_v29  ;;  %1034 = vtanh.f32 %v731_v29  ;;  %v732_v32 = vadd.f32 %v729_v28, %v723_v30  ;;  %v739_v41 = vunpack.c.l.bf16 %v673_v37 }
 0x1e3   : > { %736 = vst [vmem:[%s350_s13 + $0x10] sm:$0xff] %v733_v31  ;;  %1036 = vtanh.f32 %v733_v31  ;;  %v738_v43 = vunpack.c.l.bf16 %v671_v38 }
 0x1e4   : > { %735 = vst [vmem:[%s350_s13 + $0x8] sm:$0xff] %v732_v32  ;;  %1038 = vtanh.f32 %v732_v32 }
 0x1ec   : > { %v1035_v40 = vpop.eup %1034 }
 0x1ed   : > { %v1037_v42 = vpop.eup %1036  ;;  %v743_v44 = vmul.f32 %v1035_v40, %v737_v39 }
 0x1ee   : > { %v1039_v45 = vpop.eup %1038  ;;  %v745_v46 = vmul.f32 %v1037_v42, %v739_v41 }
 0x1ef   : > { %746 = vst [vmem:[%s356_s16] sm:$0xff] %v743_v44  ;;  %v744_v47 = vmul.f32 %v1039_v45, %v738_v43 }
 0x1f0   : > { %748 = vst [vmem:[%s356_s16 + $0x10] sm:$0xff] %v745_v46 }
 0x1f1   : > { %747 = vst [vmem:[%s356_s16 + $0x8] sm:$0xff] %v744_v47 }
 0x1f2 PF: > { %p13_p12 = scmp.ge.s32.totalorder %s1146_s24, 4   ;;  %s1250_s18 = smov %s1066_s19 }
 0x1f3   : > { %s1251_s19 = smov %s1163_s6  ;;  %s1252_s20 = smov %s1074_s21 }
 0x1f4   : > { %s1253_s21 = smov %s1156_s28  ;;  %s1254_s22 = smov %s1146_s24 }
 0x1f5   :  { %15 = sbr.rel (!%p13_p12) target bundleno = 3 (0x3), region = 158 }

</bundles_post_ra>
